<compile_context>
chip_gen: v7x
topology: tpu7x:2x2x1
jax: 0.10.0
libtpu: 0.0.40
codegen_flags: <defaults>
</compile_context>

<pallas_src>
import functools

import numpy as np
import jax
import jax.numpy as jnp
from jax.experimental import pallas as pl
from jax.experimental.pallas import tpu as pltpu

_NEG = -1e30      # "minus infinity" sentinel for the masked max (bf16-representable,
                  # rounds to ~-1.004e30 in bf16 which is fine for the threshold below)
_THRESH = -1e29   # anything below this => node had no incoming edge -> fill with 0
_PALLAS_MIN_NODES = 256  # below this the whole problem fits one tile: use fused XLA


def _round_up(v, m):
    return (v + m - 1) // m * m


def _pick_tiles(n):
    """Return (tn, ts): dst tile (output lane axis) and src tile (reduction axis)."""
    if n <= 256:
        tn = 128          # >= 2 dst tiles as soon as n > 128 (v7x megacore sharding)
    elif n <= 1024:
        tn = 256
    elif n <= 4096:
        tn = 512
    else:
        tn = 1024
    if n <= 1024:
        ts = _round_up(n, 128)   # single reduction step, minimal src padding
    elif n <= 4096:
        ts = 512
    else:
        ts = 1024
    # Largest blocks: bias (1024,1024) bf16 = 2 MiB -> 4 MiB double-buffered,
    # far under the 32 MiB scoped-VMEM default on every generation (incl. v7x).
    return tn, ts


def _default_compute_dtype():
    """bf16 masked add/max on chips with a bf16 VALU (v6e/v7x); f32 on v5e/v4."""
    try:
        kind = jax.devices()[0].device_kind.lower()
    except Exception:
        return jnp.float32
    if "v6" in kind or "v7" in kind:
        return jnp.bfloat16
    return jnp.float32


def _pointnet_conv_kernel(x_ref, pos_ref, shiftT_ref, biasT_ref, outT_ref, *,
                          n_feat, n_pos, rows_pad):
    """One (dst-tile, src-tile) step of PointNetConv max aggregation.

    Steady state (compute dtype bf16 on v6e/v7x, f32 on v5e):
        accT[f,  i] = max_j ( x[j, f]   + bias[j, i] )      f < n_feat
        accT[F+p,i] = max_j ( pos[j, p] + bias[j, i] )      bias = 0 / -1e30
    Finalize (f32): accT -= shiftT (pos_dst rows only), then rows still below
    -1e29 (no incoming edge) are zero-filled.  Running max over src tiles is
    kept in the resident f32 output block.
    """
    k = pl.program_id(1)

    @pl.when(k == 0)
    def _init():
        outT_ref[...] = jnp.full(outT_ref.shape, _NEG, outT_ref.dtype)

    cdt = x_ref.dtype
    bias = biasT_ref[...].astype(cdt)        # [TS, TN]; 0 if edge j->i else -1e30
    x_src = x_ref[...]                       # [TS, F]  source node features
    pos_src = pos_ref[...]                   # [TS, P]  source positions

    rows = []
    # --- node-feature half of the message ---
    for f in range(n_feat):
        vals = x_src[:, f:f + 1] + bias                     # broadcast over dst lanes
        rows.append(jnp.max(vals, axis=0, keepdims=True))   # [1, TN] lane-dense
    # --- position half of the message (dst shift folded into finalize) ---
    for p in range(n_pos):
        vals = pos_src[:, p:p + 1] + bias
        rows.append(jnp.max(vals, axis=0, keepdims=True))
    n_rows = n_feat + n_pos
    if rows_pad > n_rows:                                   # full-sublane block
        rows.append(jnp.full((rows_pad - n_rows, bias.shape[1]), _NEG, cdt))

    blk = jnp.concatenate(rows, axis=0).astype(jnp.float32)  # [rows_pad, TN]
    outT_ref[...] = jnp.maximum(outT_ref[...], blk)

    @pl.when(k == pl.num_programs(1) - 1)
    def _finalize():
        # shiftT holds pos_dst^T on the position rows and 0 elsewhere; -1e30
        # minus an O(1) shift still trips the empty-neighbourhood threshold.
        acc = outT_ref[...] - shiftT_ref[...]
        outT_ref[...] = jnp.where(acc > _THRESH, acc, 0.0)


def _pointnet_conv_xla(x, pos, edge_index):
    """Fused-XLA fallback / reference: scatter-max over incoming edges."""
    src, dst = edge_index[0], edge_index[1]
    n = x.shape[0]
    x = x.astype(jnp.float32)
    pos = pos.astype(jnp.float32)
    msg = jnp.concatenate([x[src], pos[src] - pos[dst]], axis=1)
    out = jax.ops.segment_max(msg, dst, num_segments=n)
    # Threshold (not isfinite) so empty-segment fill (-inf OR dtype-min) matches
    # the Pallas path's zero-fill exactly.
    return jnp.where(out > _THRESH, out, 0.0)


@functools.partial(jax.jit, static_argnames=("use_pallas", "compute_dtype"))
def _pointnet_conv_impl(x, pos, edge_index, *, use_pallas, compute_dtype):
    if not use_pallas:
        return _pointnet_conv_xla(x, pos, edge_index)

    cdt = jnp.dtype(compute_dtype)
    x = x.astype(jnp.float32)
    pos = pos.astype(jnp.float32)
    n, n_feat = x.shape
    n_pos = pos.shape[1]
    n_rows = n_feat + n_pos
    rows_pad = _round_up(n_rows, 8)

    src, dst = edge_index[0], edge_index[1]
    tn, ts = _pick_tiles(n)
    n_dst_pad = _round_up(n, tn)
    n_src_pad = _round_up(n, ts)

    # bf16 bias matrix, transposed: biasT[j, i] = 0 iff edge j -> i, else -1e30.
    # Padded nodes keep -1e30 everywhere (no edges) so they never win the max.
    biasT = jnp.full((n_src_pad, n_dst_pad), _NEG, jnp.bfloat16).at[src, dst].set(0.0)

    x_pad = jnp.zeros((n_src_pad, n_feat), cdt).at[:n].set(x.astype(cdt))
    pos_pad = jnp.zeros((n_src_pad, n_pos), cdt).at[:n].set(pos.astype(cdt))

    # Lane-dense destination shift: rows [n_feat, n_feat+n_pos) carry pos^T,
    # all other rows are zero.  Subtracted once in the finalize block (f32).
    shiftT = jnp.zeros((rows_pad, n_dst_pad), jnp.float32)
    shiftT = shiftT.at[n_feat:n_rows, :n].set(pos.T)

    kernel = functools.partial(_pointnet_conv_kernel,
                               n_feat=n_feat, n_pos=n_pos, rows_pad=rows_pad)
    outT = pl.pallas_call(
        kernel,
        grid=(n_dst_pad // tn, n_src_pad // ts),
        in_specs=[
            pl.BlockSpec((ts, n_feat), lambda i, k: (k, 0)),    # x       (source rows)
            pl.BlockSpec((ts, n_pos), lambda i, k: (k, 0)),     # pos     (source rows)
            pl.BlockSpec((rows_pad, tn), lambda i, k: (0, i)),  # shift^T (dst lanes)
            pl.BlockSpec((ts, tn), lambda i, k: (k, i)),        # bias^T  [src, dst] bf16
        ],
        out_specs=pl.BlockSpec((rows_pad, tn), lambda i, k: (0, i)),
        out_shape=jax.ShapeDtypeStruct((rows_pad, n_dst_pad), jnp.float32),
        compiler_params=pltpu.CompilerParams(
            dimension_semantics=("parallel", "arbitrary")),
    )(x_pad, pos_pad, shiftT, biasT)

    return outT[:n_rows, :n].T                                  # back to [N, F+P]


def pointnet_conv(x, pos, edge_index, *, use_pallas=None, compute_dtype=None):
    """PointNetConv(local_nn=None, global_nn=None, aggr='max', add_self_loops=False)."""
    n = x.shape[0]
    if use_pallas is None:
        use_pallas = n >= _PALLAS_MIN_NODES
    if compute_dtype is None:
        compute_dtype = _default_compute_dtype()
    return _pointnet_conv_impl(x, pos, edge_index,
                               use_pallas=bool(use_pallas),
                               compute_dtype=jnp.dtype(compute_dtype).name)


def polyhedron_model_forward(x, pos, edge_index, edge_attr=None, batch=None,
                             targets=None, *, use_pallas=None, compute_dtype=None):
    """Mirrors PolyhedronModel.forward: only PointNetConv runs; edge_attr/batch unused."""
    out = pointnet_conv(x, pos, edge_index,
                        use_pallas=use_pallas, compute_dtype=compute_dtype)
    if targets is None:
        loss = None
        mape_loss = None
    else:
        pred = out
        if pred.ndim > 1 and pred.shape[1] == 1:        # torch.squeeze(out, dim=1)
            pred = jnp.squeeze(pred, axis=1)
        loss = jnp.mean((pred - targets) ** 2)          # nn.MSELoss()
        mape_loss = jnp.mean(jnp.abs((pred - targets) / targets))
    return out, loss, mape_loss


if __name__ == "__main__":
    key = jax.random.PRNGKey(0)
    N, F, P = 16, 4, 3            # nodes, n_node_features, pos dim
    n_edge_features = 2

    k1, k2, k3 = jax.random.split(key, 3)
    x = jax.random.normal(k1, (N, F), dtype=jnp.float32)
    pos = jax.random.normal(k2, (N, P), dtype=jnp.float32)

    # Graph: bidirectional ring + a few chords; then drop every edge into nodes
    # 6 and 13 so the empty-neighbourhood (zero-fill) path is actually exercised.
    ring = np.arange(N)
    src = np.concatenate([ring, (ring + 1) % N, np.array([0, 5, 9, 12])])
    dst = np.concatenate([(ring + 1) % N, ring, np.array([7, 2, 14, 3])])
    keep = (dst != 6) & (dst != 13)
    src, dst = src[keep], dst[keep]
    edge_index = jnp.asarray(np.stack([src, dst]), dtype=jnp.int32)

    # Present in data_batch but unused by forward()'s compute:
    edge_attr = jax.random.normal(k3, (edge_index.shape[1], n_edge_features), jnp.float32)
    batch = jnp.zeros((N,), jnp.int32)

    # Compute dtype the kernel will pick on this chip (bf16 on v6e/v7x, f32 on v5e/v4);
    # bf16 messages need a looser comparison tolerance against the f32 reference.
    cdt = _default_compute_dtype()
    tol = 1e-5 if jnp.dtype(cdt) == jnp.dtype(jnp.float32) else 3e-2

    # Force the Pallas path even at this toy size so the kernel itself is exercised
    # (the auto-dispatch would route N=16 to the fused-XLA fallback).
    out, loss, mape = polyhedron_model_forward(x, pos, edge_index, edge_attr, batch,
                                               use_pallas=True)
    out = jax.block_until_ready(out)
    assert out.shape == (N, F + P) and loss is None and mape is None

    ref = _pointnet_conv_xla(x, pos, edge_index)
    np.testing.assert_allclose(np.asarray(out), np.asarray(ref), atol=tol, rtol=tol)
    assert np.all(np.asarray(out)[[6, 13]] == 0.0)   # empty neighbourhoods -> exact 0

    # Medium graph: exercises the multi-dst-tile grid ("parallel" axis), padding
    # and the multi-node random-edge / empty-neighbourhood handling.
    N2 = 300
    k4, k5, k6, k7 = jax.random.split(jax.random.PRNGKey(1), 4)
    x2 = jax.random.normal(k4, (N2, F), dtype=jnp.float32)
    pos2 = jax.random.normal(k5, (N2, P), dtype=jnp.float32)
    e_src = jax.random.randint(k6, (4 * N2,), 0, N2, dtype=jnp.int32)
    e_dst = jax.random.randint(k7, (4 * N2,), 0, N2, dtype=jnp.int32)
    edge_index2 = jnp.stack([e_src, e_dst])

    out2, _, _ = polyhedron_model_forward(x2, pos2, edge_index2, use_pallas=True)
    out2 = jax.block_until_ready(out2)
    ref2 = _pointnet_conv_xla(x2, pos2, edge_index2)
    np.testing.assert_allclose(np.asarray(out2), np.asarray(ref2), atol=tol, rtol=tol)

    print("KERNEL_OK")
</pallas_src>

<mosaic_0001>
module attributes {stable_mosaic.version = 11 : i64} {
  func.func @_pointnet_conv_kernel(%arg0: i32, %arg1: i32, %arg2: memref<128x4xf32, #tpu.memory_space<vmem>>, %arg3: memref<128x3xf32, #tpu.memory_space<vmem>>, %arg4: memref<8x128xf32, #tpu.memory_space<vmem>>, %arg5: memref<128x128xbf16, #tpu.memory_space<vmem>>, %arg6: memref<8x128xf32, #tpu.memory_space<vmem>>) attributes {dimension_semantics = [#tpu.dimension_semantics<parallel>, #tpu.dimension_semantics<arbitrary>], iteration_bounds = array<i64: 1, 1>, scalar_prefetch = 0 : i64, scratch_operands = 0 : i64, tpu.core_type = #tpu.core_type<tc>, window_params = [{transform_indices = @transform_0, window_bounds = array<i64: 128, 4>}, {transform_indices = @transform_1, window_bounds = array<i64: 128, 3>}, {transform_indices = @transform_2, window_bounds = array<i64: 8, 128>}, {transform_indices = @transform_3, window_bounds = array<i64: 128, 128>}, {transform_indices = @transform_4, window_bounds = array<i64: 8, 128>}]} {
    %c0_i32 = arith.constant 0 : i32
    %0 = arith.cmpi eq, %arg1, %c0_i32 : i32
    %1 = arith.extui %0 : i1 to i32
    %c0_i32_0 = arith.constant 0 : i32
    %2 = arith.cmpi ne, %1, %c0_i32_0 : i32
    scf.if %2 {
      %cst_19 = arith.constant -1.000000e+30 : f32
      %50 = vector.broadcast %cst_19 : f32 to vector<8x128xf32>
      %c0_20 = arith.constant 0 : index
      %c0_21 = arith.constant 0 : index
      %51 = vector.load %arg6[%c0_20, %c0_21] : memref<8x128xf32, #tpu.memory_space<vmem>>, vector<8x128xf32>
      tpu.vector_store %arg6[%c0_20, %c0_21], %50 {strides = array<i32>} : memref<8x128xf32, #tpu.memory_space<vmem>>, vector<8x128xf32>,
    } else {
    }
    %c0 = arith.constant 0 : index
    %c0_1 = arith.constant 0 : index
    %3 = vector.load %arg5[%c0, %c0_1] : memref<128x128xbf16, #tpu.memory_space<vmem>>, vector<128x128xbf16>
    %4 = arith.extf %3 : vector<128x128xbf16> to vector<128x128xf32>
    %c0_2 = arith.constant 0 : index
    %c0_3 = arith.constant 0 : index
    %5 = vector.load %arg2[%c0_2, %c0_3] : memref<128x4xf32, #tpu.memory_space<vmem>>, vector<128x4xf32>
    %c0_4 = arith.constant 0 : index
    %c0_5 = arith.constant 0 : index
    %6 = vector.load %arg3[%c0_4, %c0_5] : memref<128x3xf32, #tpu.memory_space<vmem>>, vector<128x3xf32>
    %7 = vector.extract_strided_slice %5 {offsets = [0, 0], sizes = [128, 1], strides = [1, 1]} : vector<128x4xf32> to vector<128x1xf32>
    %8 = vector.broadcast %7 : vector<128x1xf32> to vector<128x128xf32>
    %9 = arith.addf %8, %4 : vector<128x128xf32>
    %cst = arith.constant dense<0xFF800000> : vector<128xf32>
    %10 = vector.multi_reduction <maximumf>, %9, %cst [0] : vector<128x128xf32> to vector<128xf32>
    %11 = vector.shape_cast %10 : vector<128xf32> to vector<1x128xf32>
    %12 = vector.extract_strided_slice %5 {offsets = [0, 1], sizes = [128, 1], strides = [1, 1]} : vector<128x4xf32> to vector<128x1xf32>
    %13 = vector.broadcast %12 : vector<128x1xf32> to vector<128x128xf32>
    %14 = arith.addf %13, %4 : vector<128x128xf32>
    %cst_6 = arith.constant dense<0xFF800000> : vector<128xf32>
    %15 = vector.multi_reduction <maximumf>, %14, %cst_6 [0] : vector<128x128xf32> to vector<128xf32>
    %16 = vector.shape_cast %15 : vector<128xf32> to vector<1x128xf32>
    %17 = vector.extract_strided_slice %5 {offsets = [0, 2], sizes = [128, 1], strides = [1, 1]} : vector<128x4xf32> to vector<128x1xf32>
    %18 = vector.broadcast %17 : vector<128x1xf32> to vector<128x128xf32>
    %19 = arith.addf %18, %4 : vector<128x128xf32>
    %cst_7 = arith.constant dense<0xFF800000> : vector<128xf32>
    %20 = vector.multi_reduction <maximumf>, %19, %cst_7 [0] : vector<128x128xf32> to vector<128xf32>
    %21 = vector.shape_cast %20 : vector<128xf32> to vector<1x128xf32>
    %22 = vector.extract_strided_slice %5 {offsets = [0, 3], sizes = [128, 1], strides = [1, 1]} : vector<128x4xf32> to vector<128x1xf32>
    %23 = vector.broadcast %22 : vector<128x1xf32> to vector<128x128xf32>
    %24 = arith.addf %23, %4 : vector<128x128xf32>
    %cst_8 = arith.constant dense<0xFF800000> : vector<128xf32>
    %25 = vector.multi_reduction <maximumf>, %24, %cst_8 [0] : vector<128x128xf32> to vector<128xf32>
    %26 = vector.shape_cast %25 : vector<128xf32> to vector<1x128xf32>
    %27 = vector.extract_strided_slice %6 {offsets = [0, 0], sizes = [128, 1], strides = [1, 1]} : vector<128x3xf32> to vector<128x1xf32>
    %28 = vector.broadcast %27 : vector<128x1xf32> to vector<128x128xf32>
    %29 = arith.addf %28, %4 : vector<128x128xf32>
    %cst_9 = arith.constant dense<0xFF800000> : vector<128xf32>
    %30 = vector.multi_reduction <maximumf>, %29, %cst_9 [0] : vector<128x128xf32> to vector<128xf32>
    %31 = vector.shape_cast %30 : vector<128xf32> to vector<1x128xf32>
    %32 = vector.extract_strided_slice %6 {offsets = [0, 1], sizes = [128, 1], strides = [1, 1]} : vector<128x3xf32> to vector<128x1xf32>
    %33 = vector.broadcast %32 : vector<128x1xf32> to vector<128x128xf32>
    %34 = arith.addf %33, %4 : vector<128x128xf32>
    %cst_10 = arith.constant dense<0xFF800000> : vector<128xf32>
    %35 = vector.multi_reduction <maximumf>, %34, %cst_10 [0] : vector<128x128xf32> to vector<128xf32>
    %36 = vector.shape_cast %35 : vector<128xf32> to vector<1x128xf32>
    %37 = vector.extract_strided_slice %6 {offsets = [0, 2], sizes = [128, 1], strides = [1, 1]} : vector<128x3xf32> to vector<128x1xf32>
    %38 = vector.broadcast %37 : vector<128x1xf32> to vector<128x128xf32>
    %39 = arith.addf %38, %4 : vector<128x128xf32>
    %cst_11 = arith.constant dense<0xFF800000> : vector<128xf32>
    %40 = vector.multi_reduction <maximumf>, %39, %cst_11 [0] : vector<128x128xf32> to vector<128xf32>
    %41 = vector.shape_cast %40 : vector<128xf32> to vector<1x128xf32>
    %cst_12 = arith.constant -1.000000e+30 : f32
    %42 = vector.broadcast %cst_12 : f32 to vector<1x128xf32>
    %43 = tpu.concatenate %11, %16, %21, %26, %31, %36, %41, %42 in 0 : vector<1x128xf32>, vector<1x128xf32>, vector<1x128xf32>, vector<1x128xf32>, vector<1x128xf32>, vector<1x128xf32>, vector<1x128xf32>, vector<1x128xf32> -> vector<8x128xf32>
    %c0_13 = arith.constant 0 : index
    %c0_14 = arith.constant 0 : index
    %44 = vector.load %arg6[%c0_13, %c0_14] : memref<8x128xf32, #tpu.memory_space<vmem>>, vector<8x128xf32>
    %45 = arith.maximumf %44, %43 : vector<8x128xf32>
    %c0_15 = arith.constant 0 : index
    %c0_16 = arith.constant 0 : index
    %46 = vector.load %arg6[%c0_15, %c0_16] : memref<8x128xf32, #tpu.memory_space<vmem>>, vector<8x128xf32>
    tpu.vector_store %arg6[%c0_15, %c0_16], %45 {strides = array<i32>} : memref<8x128xf32, #tpu.memory_space<vmem>>, vector<8x128xf32>,
    %c0_i32_17 = arith.constant 0 : i32
    %47 = arith.cmpi eq, %arg1, %c0_i32_17 : i32
    %48 = arith.extui %47 : i1 to i32
    %c0_i32_18 = arith.constant 0 : i32
    %49 = arith.cmpi ne, %48, %c0_i32_18 : i32
    scf.if %49 {
      %c0_19 = arith.constant 0 : index
      %c0_20 = arith.constant 0 : index
      %50 = vector.load %arg6[%c0_19, %c0_20] : memref<8x128xf32, #tpu.memory_space<vmem>>, vector<8x128xf32>
      %c0_21 = arith.constant 0 : index
      %c0_22 = arith.constant 0 : index
      %51 = vector.load %arg4[%c0_21, %c0_22] : memref<8x128xf32, #tpu.memory_space<vmem>>, vector<8x128xf32>
      %52 = arith.subf %50, %51 : vector<8x128xf32>
      %cst_23 = arith.constant -1.000000e+29 : f32
      %53 = vector.broadcast %cst_23 : f32 to vector<8x128xf32>
      %54 = arith.cmpf ogt, %52, %53 : vector<8x128xf32>
      %cst_24 = arith.constant 0.000000e+00 : f32
      %55 = vector.broadcast %cst_24 : f32 to vector<8x128xf32>
      %56 = arith.select %54, %52, %55 : vector<8x128xi1>, vector<8x128xf32>
      %c0_25 = arith.constant 0 : index
      %c0_26 = arith.constant 0 : index
      %57 = vector.load %arg6[%c0_25, %c0_26] : memref<8x128xf32, #tpu.memory_space<vmem>>, vector<8x128xf32>
      tpu.vector_store %arg6[%c0_25, %c0_26], %56 {strides = array<i32>} : memref<8x128xf32, #tpu.memory_space<vmem>>, vector<8x128xf32>,
    } else {
    }
    return
  }
  func.func @transform_0(%arg0: i32, %arg1: i32) -> (i32, i32) {
    %c0_i32 = arith.constant 0 : i32
    %c0_i32_0 = arith.constant 0 : i32
    return %arg1, %c0_i32 : i32, i32
  }
  func.func @transform_1(%arg0: i32, %arg1: i32) -> (i32, i32) {
    %c0_i32 = arith.constant 0 : i32
    %c0_i32_0 = arith.constant 0 : i32
    return %arg1, %c0_i32 : i32, i32
  }
  func.func @transform_2(%arg0: i32, %arg1: i32) -> (i32, i32) {
    %c0_i32 = arith.constant 0 : i32
    %c0_i32_0 = arith.constant 0 : i32
    return %c0_i32, %arg0 : i32, i32
  }
  func.func @transform_3(%arg0: i32, %arg1: i32) -> (i32, i32) {
    %c0_i32 = arith.constant 0 : i32
    return %arg1, %arg0 : i32, i32
  }
  func.func @transform_4(%arg0: i32, %arg1: i32) -> (i32, i32) {
    %c0_i32 = arith.constant 0 : i32
    %c0_i32_0 = arith.constant 0 : i32
    return %c0_i32, %arg0 : i32, i32
  }
}

</mosaic_0001>

<bundles_post_ra>
// kernel: _pointnet_conv_impl.1
= control target key start
LH: loop header
LB: loop body
LE: loop exit
PB: predicated region body
PF: predicated region fallthrough
CT: control target
= control target key end

     0   :  { %v914_v0 = vmov 3   ;;  %v915_v1 = vmov 0   ;;  %v1586_v12 = vmov 1   ;;  %v1588_v20 = vmov 2   ;;  %s1581_s0 = inlined_call_operand.vmem [shape: f32[128,4], index: 0, kind: input, shape index: {}]   ;;  %s1582_s1 = inlined_call_operand.vmem [shape: f32[128,3], index: 1, kind: input, shape index: {}]   ;;  %s1583_s3 = inlined_call_operand.vmem [shape: bf16[128,128], index: 3, kind: input, shape index: {}]   ;;  %s1584_s2 = inlined_call_operand.vmem [shape: f32[8,128], index: 2, kind: input, shape index: {}]   ;;  %s1585_s4 = inlined_call_operand.vmem [shape: f32[8,128], index: 4, kind: output, shape index: {}]  }
   0x1   :  { %902 = vset.pattern.permute.xlu0 %v914_v0  ;;  %899 = vset.pattern.permute.xlu1 %v915_v1  ;;  %v948_v2 = vld [vmem:[%s1581_s0 + $0x10] sm:$0xff]  ;;  %v953_v3 = vld [vmem:[%s1581_s0] sm:$0xff]  ;;  %v960_v4 = vld [vmem:[%s1581_s0 + $0x18] sm:$0xff]  ;;  %vm825_vm0 = vcmask 1040384   ;;  %vm827_vm1 = vcmask 1041408   ;;  %vm829_vm2 = vcmask 1042432  }
   0x2   :  { %98 = vperm.xlu1 %899, %v948_v2   ;;  %406 = vperm.xlu0 %902, %v953_v3   ;;  %v967_v5 = vld [vmem:[%s1581_s0 + $0x28] sm:$0xff]  ;;  %v974_v6 = vld [vmem:[%s1581_s0 + $0x38] sm:$0xff]  ;;  %v1020_v13 = vld [vmem:[%s1581_s0 + $0x20] sm:$0xff]  ;;  %vm831_vm3 = vcmask 1043456   ;;  %vm833_vm4 = vcmask 1044480   ;;  %vm835_vm5 = vcmask 1045504  }
   0x3   :  { %v981_v7 = vld [vmem:[%s1581_s0 + $0x48] sm:$0xff]  ;;  %v988_v8 = vld [vmem:[%s1581_s0 + $0x58] sm:$0xff]  ;;  %v1027_v14 = vld [vmem:[%s1581_s0 + $0x30] sm:$0xff]  ;;  %vm837_vm6 = vcmask 1046528  }
   0x4   :  { %v995_v9 = vld [vmem:[%s1581_s0 + $0x68] sm:$0xff]  ;;  %v1002_v10 = vld [vmem:[%s1581_s0 + $0x78] sm:$0xff]  ;;  %v1034_v15 = vld [vmem:[%s1581_s0 + $0x40] sm:$0xff] }
   0x5   :  { %v1009_v11 = vld [vmem:[%s1581_s0 + $0x8] sm:$0xff]  ;;  %v1041_v16 = vld [vmem:[%s1581_s0 + $0x50] sm:$0xff]  ;;  %v1048_v17 = vld [vmem:[%s1581_s0 + $0x60] sm:$0xff] }
   0x6   :  { %103 = vperm.xlu1 %899, %v960_v4   ;;  %418 = vperm.xlu0 %902, %v960_v4   ;;  %v1055_v18 = vld [vmem:[%s1581_s0 + $0x70] sm:$0xff]  ;;  %v1062_v19 = vld [vmem:[%s1582_s1 + $0x8] sm:$0xff]  ;;  %v1070_v21 = vld [vmem:[%s1582_s1 + $0x20] sm:$0xff] }
   0x7   :  { %v1077_v22 = vld [vmem:[%s1582_s1 + $0x30] sm:$0xff]  ;;  %v1084_v23 = vld [vmem:[%s1582_s1 + $0x40] sm:$0xff]  ;;  %v1141_v30 = vld [vmem:[%s1582_s1 + $0x18] sm:$0xff] }
   0x8   :  { %v1091_v24 = vld [vmem:[%s1582_s1 + $0x50] sm:$0xff]  ;;  %v1098_v25 = vld [vmem:[%s1582_s1 + $0x60] sm:$0xff]  ;;  %v1150_v33 = vld [vmem:[%s1582_s1 + $0x28] sm:$0xff] }
   0x9   :  { %v1105_v26 = vld [vmem:[%s1582_s1 + $0x70] sm:$0xff]  ;;  %v1130_v27 = vld [vmem:[%s1582_s1] sm:$0xff]  ;;  %v1161_v36 = vld [vmem:[%s1582_s1 + $0x38] sm:$0xff] }
   0xa   :  { %113 = vperm.xlu1 %899, %v967_v5   ;;  %426 = vperm.xlu0 %902, %v967_v5   ;;  %v1167_v37 = vld [vmem:[%s1583_s3 + $0x18] sm:$0xff]   ;;  %v1172_v38 = vld [vmem:[%s1582_s1 + $0x10] sm:$0xff]  ;;  %v1178_v39 = vld [vmem:[%s1583_s3 + $0x8] sm:$0xff]  }
   0xb   :  { %v1183_v42 = vunpack.c.h.bf16 %v1178_v39  ;;  %v1186_v43 = vunpack.c.h.bf16 %v1167_v37  ;;  %v1199_v48 = vld [vmem:[%s1582_s1 + $0x58] sm:$0xff]  ;;  %v1204_v49 = vld [vmem:[%s1583_s3 + $0x28] sm:$0xff]  }
   0xc   :  { %v1209_v51 = vunpack.c.h.bf16 %v1204_v49  ;;  %v1225_v58 = vld [vmem:[%s1582_s1 + $0x78] sm:$0xff]  ;;  %v1236_v60 = vld [vmem:[%s1582_s1 + $0x48] sm:$0xff] }
   0xd   :  { %v1230_v59 = vld [vmem:[%s1583_s3 + $0x38] sm:$0xff]  }
   0xe   :  { %123 = vperm.xlu1 %899, %v974_v6   ;;  %434 = vperm.xlu0 %902, %v974_v6   ;;  %v1240_v61 = vunpack.c.h.bf16 %v1230_v59 }
  0x12   :  { %133 = vperm.xlu1 %899, %v981_v7   ;;  %442 = vperm.xlu0 %902, %v981_v7  }
  0x16   :  { %143 = vperm.xlu1 %899, %v988_v8   ;;  %450 = vperm.xlu0 %902, %v988_v8  }
  0x1a   :  { %153 = vperm.xlu1 %899, %v995_v9   ;;  %458 = vperm.xlu0 %902, %v995_v9  }
  0x1e   :  { %163 = vperm.xlu1 %899, %v1002_v10   ;;  %466 = vperm.xlu0 %902, %v1002_v10  }
  0x22   :  { %900 = vset.pattern.permute.xlu1 %v1586_v12  ;;  %904 = vset.pattern.permute.xlu0 %v915_v1 }
  0x23   :  { %208 = vperm.xlu1 %900, %v1009_v11   ;;  %88 = vperm.xlu0 %904, %v953_v3  }
  0x27   :  { %212 = vperm.xlu1 %900, %v948_v2   ;;  %93 = vperm.xlu0 %904, %v1009_v11  }
  0x2b   :  { %220 = vperm.xlu1 %900, %v1020_v13   ;;  %108 = vperm.xlu0 %904, %v1020_v13  }
  0x2f   :  { %228 = vperm.xlu1 %900, %v1027_v14   ;;  %118 = vperm.xlu0 %904, %v1027_v14  }
  0x33   :  { %236 = vperm.xlu1 %900, %v1034_v15   ;;  %128 = vperm.xlu0 %904, %v1034_v15  }
  0x37   :  { %244 = vperm.xlu1 %900, %v1041_v16   ;;  %138 = vperm.xlu0 %904, %v1041_v16  }
  0x3b   :  { %252 = vperm.xlu1 %900, %v1048_v17   ;;  %148 = vperm.xlu0 %904, %v1048_v17  }
  0x3f   :  { %260 = vperm.xlu1 %900, %v1055_v18   ;;  %158 = vperm.xlu0 %904, %v1055_v18  }
  0x43   :  { %901 = vset.pattern.permute.xlu1 %v1588_v20  ;;  %513 = vperm.xlu0 %904, %v1062_v19  }
  0x44   :  { %305 = vperm.xlu1 %901, %v953_v3  }
  0x47   :  { %528 = vperm.xlu0 %904, %v1070_v21  }
  0x48   :  { %313 = vperm.xlu1 %901, %v948_v2  }
  0x4b   :  { %538 = vperm.xlu0 %904, %v1077_v22  }
  0x4c   :  { %317 = vperm.xlu1 %901, %v960_v4  }
  0x4f   :  { %548 = vperm.xlu0 %904, %v1084_v23  }
  0x50   :  { %325 = vperm.xlu1 %901, %v967_v5  }
  0x53   :  { %558 = vperm.xlu0 %904, %v1091_v24  }
  0x54   :  { %333 = vperm.xlu1 %901, %v974_v6  }
  0x57   :  { %568 = vperm.xlu0 %904, %v1098_v25  }
  0x58   :  { %341 = vperm.xlu1 %901, %v981_v7  }
  0x5b   :  { %578 = vperm.xlu0 %904, %v1105_v26  }
  0x5c   :  { %349 = vperm.xlu1 %901, %v988_v8  }
  0x5f   :  { %906 = vset.pattern.permute.xlu0 %v1586_v12 }
  0x60   :  { %204 = vperm.xlu0 %906, %v953_v3   ;;  %357 = vperm.xlu1 %901, %v995_v9  }
  0x64   :  { %216 = vperm.xlu0 %906, %v960_v4   ;;  %365 = vperm.xlu1 %901, %v1002_v10   ;;  %v1258_v4 = vld [vmem:[%s1582_s1 + $0x68] sm:$0xff] }
  0x68   :  { %224 = vperm.xlu0 %906, %v967_v5   ;;  %903 = vset.pattern.permute.xlu1 %v914_v0  ;;  %v856_v5 = vld [vmem:[%s1583_s3] sm:$0xff]  }
  0x69   :  { %410 = vperm.xlu1 %903, %v1009_v11  }
  0x6c   :  { %232 = vperm.xlu0 %906, %v974_v6  }
  0x6d   :  { %414 = vperm.xlu1 %903, %v948_v2  }
  0x70   :  { %240 = vperm.xlu0 %906, %v981_v7  }
  0x71   :  { %422 = vperm.xlu1 %903, %v1020_v13  }
  0x74   :  { %248 = vperm.xlu0 %906, %v988_v8   ;;  %v1265_v8 = vunpack.c.l.bf16 %v856_v5 }
  0x75   :  { %430 = vperm.xlu1 %903, %v1027_v14  }
  0x78   :  { %256 = vperm.xlu0 %906, %v995_v9   ;;  %v888_v9 = vld [vmem:[%s1583_s3 + $0x10] sm:$0xff]  }
  0x79   :  { %438 = vperm.xlu1 %903, %v1034_v15  }
  0x7c   :  { %264 = vperm.xlu0 %906, %v1002_v10  }
  0x7d   :  { %446 = vperm.xlu1 %903, %v1041_v16  }
  0x80   :  { %624 = vperm.xlu0 %906, %v1130_v27  }
  0x81   :  { %v1133_v28 = vpop.permute.xlu1 %98  ;;  %454 = vperm.xlu1 %903, %v1048_v17   ;;  %v1136_v29 = vpop.permute.xlu0 %406 }
  0x84   :  { %636 = vperm.xlu0 %906, %v1141_v30  }
  0x85   :  { %v1144_v31 = vpop.permute.xlu1 %103  ;;  %462 = vperm.xlu1 %903, %v1055_v18   ;;  %v419_v32 = vpop.permute.xlu0 %418 }
  0x86   :  { %v472_v44 = vadd.f32 %v1183_v42, %v419_v32 }
  0x88   :  { %644 = vperm.xlu0 %906, %v1150_v33  }
  0x89   :  { %v1153_v34 = vpop.permute.xlu1 %113  ;;  %905 = vset.pattern.permute.xlu1 %v915_v1  ;;  %v1156_v35 = vpop.permute.xlu0 %426 }
  0x8a   :  { %508 = vperm.xlu1 %905, %v1130_v27  }
  0x8c   :  { %652 = vperm.xlu0 %906, %v1161_v36  }
  0x8d   :  { %v1180_v40 = vpop.permute.xlu1 %123  ;;  %v435_v41 = vpop.permute.xlu0 %434 }
  0x8e   :  { %518 = vperm.xlu1 %905, %v1172_v38   ;;  %v476_v45 = vadd.f32 %v1186_v43, %v435_v41 }
  0x90   :  { %656 = vperm.xlu0 %906, %v1084_v23   ;;  %v488_v50 = vmax.f32 %v472_v44, %v476_v45 }
  0x91   :  { %v1192_v46 = vpop.permute.xlu1 %133  ;;  %v1194_v47 = vpop.permute.xlu0 %442 }
  0x92   :  { %523 = vperm.xlu1 %905, %v1141_v30  }
  0x94   :  { %668 = vperm.xlu0 %906, %v1199_v48  }
  0x95   :  { %v1211_v52 = vpop.permute.xlu1 %143  ;;  %v451_v53 = vpop.permute.xlu0 %450 }
  0x96   :  { %v480_v54 = vadd.f32 %v1209_v51, %v451_v53  ;;  %533 = vperm.xlu1 %905, %v1150_v33   ;;  %v1280_v53 = vunpack.c.h.bf16 %v888_v9 }
  0x98   :  { %v1215_v55 = vmax.f32 %v488_v50, %v480_v54  ;;  %672 = vperm.xlu0 %906, %v1098_v25   ;;  %v1285_v54 = vunpack.c.h.bf16 %v856_v5 }
  0x99   :  { %v1218_v56 = vpop.permute.xlu1 %153  ;;  %v1220_v57 = vpop.permute.xlu0 %458 }
  0x9a   :  { %1592 = vst [vmem:[#allocation2_spill] sm:$0xff] %v1215_v55  ;;  %543 = vperm.xlu1 %905, %v1161_v36  }
  0x9c   :  { %684 = vperm.xlu0 %906, %v1225_v58  }
  0x9d   :  { %v1242_v62 = vpop.permute.xlu1 %163  ;;  %v467_v63 = vpop.permute.xlu0 %466 }
  0x9e   :  { %v1245_v0 = vadd.f32 %v1240_v61, %v467_v63  ;;  %553 = vperm.xlu1 %905, %v1236_v60   ;;  %v1288_v63 = vunpack.c.l.bf16 %v1167_v37  ;;  %v171_v37 = vadd.f32 %v1280_v53, %v1153_v34 }
  0xa0   :  { %1593 = vst [vmem:[#allocation3_spill] sm:$0xff] %v1245_v0  ;;  %912 = vset.pattern.permute.xlu0 %v1588_v20 }
  0xa1   :  { %309 = vperm.xlu0 %912, %v1009_v11   ;;  %v1272_v11 = vunpack.c.l.bf16 %v888_v9 }
  0xa2   :  { %v1252_v2 = vpop.permute.xlu1 %208  ;;  %v89_v3 = vpop.permute.xlu0 %88  ;;  %563 = vperm.xlu1 %905, %v1199_v48  }
  0xa3   :  { %v166_v10 = vadd.f32 %v1265_v8, %v89_v3  ;;  %v1292_v3 = vunpack.c.l.bf16 %v1178_v39 }
  0xa5   :  { %321 = vperm.xlu0 %912, %v1020_v13  }
  0xa6   :  { %v213_v6 = vpop.permute.xlu1 %212  ;;  %v94_v7 = vpop.permute.xlu0 %93  ;;  %573 = vperm.xlu1 %905, %v1258_v4  }
  0xa9   :  { %329 = vperm.xlu0 %912, %v1027_v14   ;;  %v890_v14 = vld [vmem:[%s1583_s3 + $0x20] sm:$0xff]  }
  0xaa   :  { %v1274_v13 = vpop.permute.xlu1 %220  ;;  %v109_v32 = vpop.permute.xlu0 %108  ;;  %583 = vperm.xlu1 %905, %v1225_v58   ;;  %v1296_v9 = vunpack.c.l.bf16 %v890_v14 }
  0xab   :  { %v170_v41 = vadd.f32 %v1272_v11, %v109_v32 }
  0xad   :  { %v182_v44 = vmax.f32 %v166_v10, %v170_v41  ;;  %337 = vperm.xlu0 %912, %v1034_v15   ;;  %v167_v15 = vadd.f32 %v1285_v54, %v94_v7  ;;  %v1298_v10 = vunpack.c.h.bf16 %v890_v14  ;;  %v892_v41 = vld [vmem:[%s1583_s3 + $0x30] sm:$0xff]   ;;  %v168_v14 = vadd.f32 %v1292_v3, %v1133_v28 }
  0xae   :  { %v229_v45 = vpop.permute.xlu1 %228  ;;  %v119_v50 = vpop.permute.xlu0 %118  ;;  %907 = vset.pattern.permute.xlu1 %v1586_v12  ;;  %v1316_v34 = vunpack.c.h.bf16 %v892_v41  ;;  %v173_v28 = vadd.f32 %v1186_v43, %v1180_v40 }
  0xaf   :  { %628 = vperm.xlu1 %907, %v1062_v19   ;;  %v172_v39 = vadd.f32 %v1288_v63, %v119_v50  ;;  %v183_v1 = vmax.f32 %v167_v15, %v171_v37  ;;  %v175_v50 = vadd.f32 %v1298_v10, %v1192_v46  ;;  %v169_v37 = vadd.f32 %v1183_v42, %v1144_v31 }
  0xb0   :  { %v177_v46 = vadd.f32 %v1209_v51, %v1211_v52  ;;  %v179_v40 = vadd.f32 %v1316_v34, %v1218_v56  ;;  %v181_v52 = vadd.f32 %v1240_v61, %v1242_v62 }
  0xb1   :  { %345 = vperm.xlu0 %912, %v1041_v16   ;;  %v1311_v16 = vunpack.c.l.bf16 %v1204_v49  ;;  %v1322_v49 = vunpack.c.l.bf16 %v892_v41  ;;  %v1335_v41 = vunpack.c.l.bf16 %v1230_v59  ;;  %v185_v31 = vmax.f32 %v169_v37, %v173_v28 }
  0xb2   :  { %v1300_v32 = vpop.permute.xlu1 %236  ;;  %v129_v5 = vpop.permute.xlu0 %128  ;;  %v1594_v28 = vmov 2  }
  0xb3   :  { %v174_v7 = vadd.f32 %v1296_v9, %v129_v5  ;;  %632 = vperm.xlu1 %907, %v1172_v38   ;;  %v184_v5 = vmax.f32 %v168_v14, %v172_v39  ;;  %v189_v59 = vmax.f32 %v185_v31, %v177_v46  ;;  %v1595_v31 = vmov 1  }
  0xb5   :  { %v186_v12 = vmax.f32 %v182_v44, %v174_v7  ;;  %353 = vperm.xlu0 %912, %v1048_v17   ;;  %v187_v44 = vmax.f32 %v183_v1, %v175_v50  ;;  %v273_v17 = vadd.f32 %v1288_v63, %v229_v45  ;;  %v269_v1 = vadd.f32 %v1292_v3, %v213_v6 }
  0xb6   :  { %v245_v20 = vpop.permute.xlu1 %244  ;;  %v139_v0 = vpop.permute.xlu0 %138  ;;  %v193_v62 = vmax.f32 %v189_v59, %v181_v52 }
  0xb7   :  { %v176_v55 = vadd.f32 %v1311_v16, %v139_v0  ;;  %640 = vperm.xlu1 %907, %v1070_v21   ;;  %v285_v45 = vmax.f32 %v269_v1, %v273_v17  ;;  %v191_v7 = vmax.f32 %v187_v44, %v179_v40 }
  0xb9   :  { %v188_v15 = vmax.f32 %v184_v5, %v176_v55  ;;  %361 = vperm.xlu0 %912, %v1055_v18   ;;  %v277_v55 = vadd.f32 %v1311_v16, %v245_v20 }
  0xba   :  { %v1332_v0 = vpop.permute.xlu1 %252  ;;  %v149_v39 = vpop.permute.xlu0 %148 }
  0xbb   :  { %v178_v18 = vadd.f32 %v1322_v49, %v149_v39  ;;  %648 = vperm.xlu1 %907, %v1077_v22   ;;  %v1346_v5 = vmax.f32 %v285_v45, %v277_v55 }
  0xbd   :  { %v190_v14 = vmax.f32 %v186_v12, %v178_v18  ;;  %729 = vperm.xlu0 %912, %v1062_v19  }
  0xbe   :  { %v261_v50 = vpop.permute.xlu1 %260  ;;  %v159_v56 = vpop.permute.xlu0 %158 }
  0xbf   :  { %v194_v6 = vmax.f32 %v190_v14, %v191_v7  ;;  %v1349_v20 = vadd.f32 %v1335_v41, %v261_v50  ;;  %v180_v39 = vadd.f32 %v1335_v41, %v159_v56  ;;  %908 = vset.pattern.permute.xlu1 %v1594_v28  ;;  %v271_v56 = vadd.f32 %v1272_v11, %v1274_v13 }
  0xc0   :  { %725 = vperm.xlu1 %908, %v1130_v27  }
  0xc1   :  { %v293_v12 = vmax.f32 %v1346_v5, %v1349_v20  ;;  %v192_v19 = vmax.f32 %v188_v15, %v180_v39  ;;  %741 = vperm.xlu0 %912, %v1070_v21   ;;  %v275_v39 = vadd.f32 %v1296_v9, %v1300_v32 }
  0xc2   :  { %v1357_v44 = vpop.permute.xlu0 %513 }
  0xc3   :  { %v195_v17 = vmax.f32 %v192_v19, %v193_v62  ;;  %v1359_v37 = vpop.permute.xlu1 %305 }
  0xc4   :  { %733 = vperm.xlu1 %908, %v1172_v38  }
  0xc5   :  { %v1362_v46 = vmax.f32 %v194_v6, %v195_v17  ;;  %749 = vperm.xlu0 %912, %v1077_v22  }
  0xc6   :  { %v1365_v40 = vpop.permute.xlu0 %528 }
  0xc7   :  { %v1367_v27 = vpop.permute.xlu1 %313 }
  0xc8   :  { %737 = vperm.xlu1 %908, %v1141_v30  }
  0xc9   :  { %761 = vperm.xlu0 %912, %v1236_v60  }
  0xca   :  { %v1371_v21 = vpop.permute.xlu0 %538 }
  0xcb   :  { %v318_v15 = vpop.permute.xlu1 %317 }
  0xcc   :  { %745 = vperm.xlu1 %908, %v1150_v33   ;;  %v371_v30 = vadd.f32 %v1183_v42, %v318_v15  ;;  %v279_v15 = vadd.f32 %v1322_v49, %v1332_v0  ;;  %v478_v0 = vadd.f32 %v1298_v10, %v1194_v47 }
  0xcd   :  { %777 = vperm.xlu0 %912, %v1258_v4  }
  0xce   :  { %v1375_v38 = vpop.permute.xlu0 %548 }
  0xcf   :  { %v1377_v1 = vpop.permute.xlu1 %325 }
  0xd0   :  { %753 = vperm.xlu1 %908, %v1161_v36  }
  0xd2   :  { %v1380_v22 = vpop.permute.xlu0 %558 }
  0xd3   :  { %v334_v55 = vpop.permute.xlu1 %333 }
  0xd4   :  { %v375_v18 = vadd.f32 %v1186_v43, %v334_v55  ;;  %909 = vset.pattern.permute.xlu1 %v1595_v31 }
  0xd5   :  { %660 = vperm.xlu1 %909, %v1236_v60  }
  0xd6   :  { %v387_v33 = vmax.f32 %v371_v30, %v375_v18  ;;  %v1386_v52 = vpop.permute.xlu0 %568 }
  0xd7   :  { %v1388_v45 = vpop.permute.xlu1 %341 }
  0xd9   :  { %664 = vperm.xlu1 %909, %v1091_v24  }
  0xda   :  { %v1391_v7 = vpop.permute.xlu0 %578 }
  0xdb   :  { %v350_v36 = vpop.permute.xlu1 %349 }
  0xdc   :  { %v379_v14 = vadd.f32 %v1209_v51, %v350_v36 }
  0xdd   :  { %910 = vset.pattern.permute.xlu1 %v1594_v28 }
  0xde   :  { %v1395_v59 = vmax.f32 %v387_v33, %v379_v14  ;;  %757 = vperm.xlu1 %910, %v1084_v23  }
  0xdf   :  { %v205_v50 = vpop.permute.xlu0 %204  ;;  %v1398_v60 = vpop.permute.xlu1 %357 }
  0xe0   :  { %v267_v6 = vadd.f32 %v1265_v8, %v205_v50 }
  0xe2   :  { %v283_v62 = vmax.f32 %v267_v6, %v271_v56  ;;  %765 = vperm.xlu1 %910, %v1091_v24   ;;  %v474_v24 = vadd.f32 %v1280_v53, %v1156_v35  ;;  %v482_v35 = vadd.f32 %v1316_v34, %v1220_v57 }
  0xe3   :  { %v217_v19 = vpop.permute.xlu0 %216  ;;  %v366_v17 = vpop.permute.xlu1 %365 }
  0xe4   :  { %v287_v23 = vmax.f32 %v283_v62, %v275_v39  ;;  %v1409_v55 = vadd.f32 %v1240_v61, %v366_v17  ;;  %v270_v36 = vadd.f32 %v1183_v42, %v217_v19  ;;  %v268_v62 = vadd.f32 %v1285_v54, %v1252_v2 }
  0xe6   :  { %v395_v13 = vmax.f32 %v1395_v59, %v1409_v55  ;;  %769 = vperm.xlu1 %910, %v1199_v48   ;;  %v291_v30 = vmax.f32 %v287_v23, %v279_v15 }
  0xe7   :  { %v225_v18 = vpop.permute.xlu0 %224 }
  0xe8   :  { %v411_v32 = vpop.permute.xlu1 %410  ;;  %v272_v48 = vadd.f32 %v1280_v53, %v225_v18 }
  0xe9   :  { %v470_v33 = vadd.f32 %v1285_v54, %v411_v32 }
  0xea   :  { %911 = vset.pattern.permute.xlu1 %v1595_v31  ;;  %v284_v17 = vmax.f32 %v268_v62, %v272_v48 }
  0xeb   :  { %v486_v14 = vmax.f32 %v470_v33, %v474_v24  ;;  %v233_v50 = vpop.permute.xlu0 %232  ;;  %676 = vperm.xlu1 %911, %v1258_v4  }
  0xec   :  { %v274_v56 = vadd.f32 %v1186_v43, %v233_v50  ;;  %v415_v6 = vpop.permute.xlu1 %414 }
  0xed   :  { %v490_v39 = vmax.f32 %v486_v14, %v478_v0  ;;  %v471_v2 = vadd.f32 %v1292_v3, %v415_v6  ;;  %v469_v0 = vadd.f32 %v1265_v8, %v1136_v29 }
  0xee   :  { %v286_v31 = vmax.f32 %v270_v36, %v274_v56 }
  0xef   :  { %v241_v19 = vpop.permute.xlu0 %240  ;;  %680 = vperm.xlu1 %911, %v1105_v26   ;;  %v494_v47 = vmax.f32 %v490_v39, %v482_v35 }
  0xf0   :  { %v276_v4 = vadd.f32 %v1298_v10, %v241_v19  ;;  %v423_v15 = vpop.permute.xlu1 %422 }
  0xf1   :  { %v473_v24 = vadd.f32 %v1272_v11, %v423_v15 }
  0xf2   :  { %v288_v23 = vmax.f32 %v284_v17, %v276_v4 }
  0xf3   :  { %v249_v18 = vpop.permute.xlu0 %248  ;;  %913 = vset.pattern.permute.xlu1 %v1594_v28  ;;  %v485_v56 = vmax.f32 %v469_v0, %v473_v24 }
  0xf4   :  { %v278_v32 = vadd.f32 %v1209_v51, %v249_v18  ;;  %773 = vperm.xlu1 %913, %v1098_v25   ;;  %v431_v57 = vpop.permute.xlu1 %430  ;;  %v197_v25 = vrot.slane %v1362_v46, 4 }
  0xf5   :  { %v475_v33 = vadd.f32 %v1288_v63, %v431_v57 }
  0xf6   :  { %v290_v36 = vmax.f32 %v286_v31, %v278_v32  ;;  %v198_v17 = vmax.f32 %v1362_v46, %v197_v25  ;;  %v1597_v25 = vld [vmem:[#allocation3_spill] sm:$0xff] }
  0xf7   :  { %v487_v14 = vmax.f32 %v471_v2, %v475_v33  ;;  %v257_v50 = vpop.permute.xlu0 %256 }
  0xf8   :  { %v280_v48 = vadd.f32 %v1316_v34, %v257_v50  ;;  %781 = vperm.xlu1 %913, %v1105_v26   ;;  %v439_v28 = vpop.permute.xlu1 %438  ;;  %v199_v57 = vrot.slane %v198_v17, 2 }
  0xf9   :  { %v477_v6 = vadd.f32 %v1296_v9, %v439_v28 }
  0xfa   :  { %v292_v35 = vmax.f32 %v288_v23, %v280_v48  ;;  %v200_v0 = vmax.f32 %v198_v17, %v199_v57 }
  0xfb   :  { %v489_v39 = vmax.f32 %v485_v56, %v477_v6  ;;  %v265_v62 = vpop.permute.xlu0 %264 }
  0xfc   :  { %v295_v19 = vmax.f32 %v291_v30, %v292_v35  ;;  %v282_v31 = vadd.f32 %v1240_v61, %v265_v62  ;;  %785 = vperm.xlu1 %913, %v1225_v58   ;;  %v447_v29 = vpop.permute.xlu1 %446  ;;  %v201_v20 = vrot.slane %v200_v0, 1 }
  0xfd   :  { %v479_v4 = vadd.f32 %v1311_v16, %v447_v29  ;;  %v594_v29 = vadd.f32 %v1296_v9, %v1375_v38  ;;  %v596_v38 = vadd.f32 %v1311_v16, %v1380_v22 }
  0xfe   :  { %v294_v26 = vmax.f32 %v290_v36, %v282_v31 }
  0xff   :  { %v491_v15 = vmax.f32 %v487_v14, %v479_v4  ;;  %v1446_v18 = vpop.permute.xlu0 %624 }
 0x100   :  { %v296_v23 = vmax.f32 %v293_v12, %v294_v26  ;;  %v455_v32 = vpop.permute.xlu1 %454  ;;  %v1596_v12 = vld [vmem:[#allocation2_spill] sm:$0xff]  ;;  %v202_v26 = vmax.f32 %v200_v0, %v201_v20 }
 0x101   :  { %v481_v30 = vadd.f32 %v1322_v49, %v455_v32  ;;  %v1598_v56 = vmax.f32 %v1596_v12, %v1597_v25 }
 0x102   :  { %v297_v2 = vmax.f32 %v295_v19, %v296_v23 }
 0x103   :  { %v493_v24 = vmax.f32 %v489_v39, %v481_v30  ;;  %v1452_v58 = vpop.permute.xlu0 %636  ;;  %v590_v39 = vadd.f32 %v1272_v11, %v1365_v40  ;;  %v598_v40 = vadd.f32 %v1322_v49, %v1386_v52 }
 0x104   :  { %v298_v33 = vrot.slane %v297_v2, 4  ;;  %v463_v46 = vpop.permute.xlu1 %462 }
 0x105   :  { %v497_v50 = vmax.f32 %v493_v24, %v494_v47  ;;  %v483_v36 = vadd.f32 %v1335_v41, %v463_v46 }
 0x106   :  { %v299_v14 = vmax.f32 %v297_v2, %v298_v33 }
 0x107   :  { %v495_v48 = vmax.f32 %v491_v15, %v483_v36  ;;  %v1455_v28 = vpop.permute.xlu0 %644  ;;  %v592_v15 = vadd.f32 %v1288_v63, %v1371_v21  ;;  %v600_v21 = vadd.f32 %v1335_v41, %v1391_v7 }
 0x108   :  { %v300_v5 = vrot.slane %v299_v14, 2 }
 0x109   :  { %v498_v6 = vmax.f32 %v495_v48, %v1598_v56  ;;  %v509_v35 = vpop.permute.xlu1 %508  ;;  %v587_v48 = vadd.f32 %v1285_v54, %v1357_v44  ;;  %v373_v44 = vadd.f32 %v1280_v53, %v1377_v1 }
 0x10a   :  { %v301_v62 = vmax.f32 %v299_v14, %v300_v5  ;;  %v586_v19 = vadd.f32 %v1265_v8, %v509_v35 }
 0x10b   :  { %v1463_v47 = vmax.f32 %v497_v50, %v498_v6  ;;  %v1465_v31 = vpop.permute.xlu0 %652 }
 0x10c   :  { %v302_v17 = vrot.slane %v301_v62, 1  ;;  %v602_v4 = vmax.f32 %v586_v19, %v590_v39 }
 0x10d   :  { %v519_v23 = vpop.permute.xlu1 %518 }
 0x10e   :  { %v303_v32 = vmax.f32 %v301_v62, %v302_v17  ;;  %v606_v57 = vmax.f32 %v602_v4, %v594_v29  ;;  %v588_v30 = vadd.f32 %v1292_v3, %v519_v23 }
 0x10f   :  { %v1474_v2 = vpop.permute.xlu0 %656 }
 0x110   :  { %v1478_v24 = vsel %vm825_vm0, %v202_v26, %v303_v32  ;;  %v604_v33 = vmax.f32 %v588_v30, %v592_v15  ;;  %v610_v46 = vmax.f32 %v606_v57, %v598_v40  ;;  %v377_v26 = vadd.f32 %v1298_v10, %v1388_v45 }
 0x111   :  { %v524_v0 = vpop.permute.xlu1 %523  ;;  %v381_v32 = vadd.f32 %v1316_v34, %v1398_v60  ;;  %v368_v60 = vadd.f32 %v1265_v8, %v1359_v37  ;;  %v500_v37 = vrot.slane %v1463_v47, 4 }
 0x112   :  { %v608_v50 = vmax.f32 %v604_v33, %v596_v38  ;;  %v589_v25 = vadd.f32 %v1183_v42, %v524_v0 }
 0x113   :  { %v1482_v36 = vpop.permute.xlu0 %668 }
 0x114   :  { %v612_v52 = vmax.f32 %v608_v50, %v600_v21 }
 0x115   :  { %v534_v14 = vpop.permute.xlu1 %533 }
 0x116   :  { %v591_v5 = vadd.f32 %v1280_v53, %v534_v14 }
 0x117   :  { %v1487_v20 = vpop.permute.xlu0 %672 }
 0x118   :  { %v603_v22 = vmax.f32 %v587_v48, %v591_v5 }
 0x119   :  { %v544_v12 = vpop.permute.xlu1 %543 }
 0x11a   :  { %v593_v56 = vadd.f32 %v1186_v43, %v544_v12 }
 0x11b   :  { %v1491_v6 = vpop.permute.xlu0 %684 }
 0x11c   :  { %v605_v7 = vmax.f32 %v589_v25, %v593_v56 }
 0x11d   :  { %v554_v35 = vpop.permute.xlu1 %553 }
 0x11e   :  { %v595_v39 = vadd.f32 %v1298_v10, %v554_v35 }
 0x120   :  { %v607_v62 = vmax.f32 %v603_v22, %v595_v39  ;;  %v310_v19 = vpop.permute.xlu0 %309 }
 0x121   :  { %v369_v29 = vadd.f32 %v1285_v54, %v310_v19  ;;  %v564_v17 = vpop.permute.xlu1 %563  ;;  %v370_v19 = vadd.f32 %v1292_v3, %v1367_v27  ;;  %v501_v27 = vmax.f32 %v1463_v47, %v500_v37 }
 0x122   :  { %v597_v4 = vadd.f32 %v1209_v51, %v564_v17 }
 0x123   :  { %v385_v15 = vmax.f32 %v369_v29, %v373_v44 }
 0x124   :  { %v609_v23 = vmax.f32 %v605_v7, %v597_v4  ;;  %v322_v40 = vpop.permute.xlu0 %321 }
 0x125   :  { %v389_v57 = vmax.f32 %v385_v15, %v377_v26  ;;  %v574_v30 = vpop.permute.xlu1 %573  ;;  %v372_v12 = vadd.f32 %v1272_v11, %v322_v40 }
 0x126   :  { %v599_v38 = vadd.f32 %v1316_v34, %v574_v30 }
 0x127   :  { %v393_v33 = vmax.f32 %v389_v57, %v381_v32  ;;  %v384_v39 = vmax.f32 %v368_v60, %v372_v12 }
 0x128   :  { %v611_v1 = vmax.f32 %v607_v62, %v599_v38  ;;  %v330_v0 = vpop.permute.xlu0 %329 }
 0x129   :  { %v584_v21 = vpop.permute.xlu1 %583 }
 0x12a   :  { %v614_v50 = vmax.f32 %v610_v46, %v611_v1  ;;  %v601_v14 = vadd.f32 %v1240_v61, %v584_v21  ;;  %v374_v46 = vadd.f32 %v1288_v63, %v330_v0 }
 0x12c   :  { %v613_v48 = vmax.f32 %v609_v23, %v601_v14  ;;  %v338_v5 = vpop.permute.xlu0 %337  ;;  %v386_v4 = vmax.f32 %v370_v19, %v374_v46  ;;  %v502_v14 = vrot.slane %v501_v27, 2 }
 0x12d   :  { %v376_v7 = vadd.f32 %v1296_v9, %v338_v5 }
 0x12e   :  { %v615_v45 = vmax.f32 %v612_v52, %v613_v48  ;;  %v629_v22 = vpop.permute.xlu1 %628 }
 0x12f   :  { %v388_v52 = vmax.f32 %v384_v39, %v376_v7 }
 0x130   :  { %v616_v25 = vmax.f32 %v614_v50, %v615_v45  ;;  %v346_v56 = vpop.permute.xlu0 %345 }
 0x131   :  { %v378_v44 = vadd.f32 %v1311_v16, %v346_v56 }
 0x132   :  { %v1508_v35 = vpop.permute.xlu1 %632  ;;  %v617_v23 = vrot.slane %v616_v25, 4 }
 0x133   :  { %v390_v40 = vmax.f32 %v386_v4, %v378_v44 }
 0x134   :  { %v354_v62 = vpop.permute.xlu0 %353  ;;  %v618_v1 = vmax.f32 %v616_v25, %v617_v23 }
 0x135   :  { %v380_v29 = vadd.f32 %v1322_v49, %v354_v62 }
 0x136   :  { %v641_v17 = vpop.permute.xlu1 %640  ;;  %v619_v48 = vrot.slane %v618_v1, 2 }
 0x137   :  { %v392_v26 = vmax.f32 %v388_v52, %v380_v29  ;;  %v691_v23 = vadd.f32 %v1272_v11, %v641_v17  ;;  %v690_v17 = vadd.f32 %v1183_v42, %v1452_v58 }
 0x138   :  { %v362_v15 = vpop.permute.xlu0 %361  ;;  %v620_v56 = vmax.f32 %v618_v1, %v619_v48 }
 0x139   :  { %v396_v32 = vmax.f32 %v392_v26, %v393_v33  ;;  %v382_v57 = vadd.f32 %v1335_v41, %v362_v15  ;;  %v503_v33 = vmax.f32 %v501_v27, %v502_v14  ;;  %v694_v14 = vadd.f32 %v1186_v43, %v1465_v31 }
 0x13a   :  { %v649_v30 = vpop.permute.xlu1 %648  ;;  %v621_v25 = vrot.slane %v620_v56, 1 }
 0x13b   :  { %v394_v38 = vmax.f32 %v390_v40, %v382_v57  ;;  %v504_v47 = vrot.slane %v503_v33, 1  ;;  %v688_v57 = vadd.f32 %v1285_v54, %v629_v22  ;;  %v693_v22 = vadd.f32 %v1288_v63, %v649_v30 }
 0x13c   :  { %v622_v62 = vmax.f32 %v620_v56, %v621_v25  ;;  %v730_v15 = vpop.permute.xlu0 %729  ;;  %v706_v31 = vmax.f32 %v690_v17, %v694_v14  ;;  %v702_v30 = vadd.f32 %v1240_v61, %v1491_v6 }
 0x13d   :  { %v397_v0 = vmax.f32 %v394_v38, %v395_v13  ;;  %v505_v13 = vmax.f32 %v503_v33, %v504_v47 }
 0x13f   :  { %v398_v21 = vmax.f32 %v396_v32, %v397_v0  ;;  %v1521_v50 = vpop.permute.xlu1 %725  ;;  %v687_v32 = vadd.f32 %v1265_v8, %v1446_v18  ;;  %v695_v0 = vadd.f32 %v1296_v9, %v1474_v2  ;;  %v689_v2 = vadd.f32 %v1292_v3, %v1508_v35 }
 0x140   :  { %v742_v1 = vpop.permute.xlu0 %741 }
 0x141   :  { %v399_v5 = vrot.slane %v398_v21, 4  ;;  %v703_v38 = vmax.f32 %v687_v32, %v691_v23  ;;  %v792_v6 = vadd.f32 %v1272_v11, %v742_v1 }
 0x143   :  { %v400_v45 = vmax.f32 %v398_v21, %v399_v5  ;;  %v1523_v12 = vpop.permute.xlu1 %733  ;;  %v707_v48 = vmax.f32 %v703_v38, %v695_v0  ;;  %v698_v5 = vadd.f32 %v1209_v51, %v1482_v36 }
 0x145   :  { %v401_v60 = vrot.slane %v400_v45, 2 }
 0x147   :  { %v402_v7 = vmax.f32 %v400_v45, %v401_v60  ;;  %v1525_v39 = vpop.permute.xlu1 %737  ;;  %v750_v60 = vpop.permute.xlu0 %749 }
 0x148   :  { %v794_v38 = vadd.f32 %v1288_v63, %v750_v60  ;;  %v791_v11 = vadd.f32 %v1183_v42, %v1525_v39 }
 0x149   :  { %v403_v46 = vrot.slane %v402_v7, 1 }
 0x14b   :  { %v404_v59 = vmax.f32 %v402_v7, %v403_v46  ;;  %v746_v55 = vpop.permute.xlu1 %745  ;;  %v705_v7 = vmax.f32 %v689_v2, %v693_v22  ;;  %v710_v46 = vmax.f32 %v706_v31, %v698_v5  ;;  %v762_v35 = vpop.permute.xlu0 %761 }
 0x14c   :  { %v797_v0 = vadd.f32 %v1298_v10, %v762_v35 }
 0x14d   :  { %v828_v19 = vsel %vm827_vm1, %v1478_v24, %v404_v59  ;;  %v692_v24 = vadd.f32 %v1280_v53, %v1455_v28  ;;  %v699_v28 = vadd.f32 %v1322_v49, %v1487_v20 }
 0x14e   :  { %v830_v52 = vsel %vm829_vm2, %v828_v19, %v505_v13 }
 0x14f   :  { %v754_v44 = vpop.permute.xlu1 %753  ;;  %v1528_v29 = vsel %vm831_vm3, %v830_v52, %v622_v62  ;;  %v704_v18 = vmax.f32 %v688_v57, %v692_v24  ;;  %v711_v47 = vmax.f32 %v707_v48, %v699_v28  ;;  %v714_v62 = vmax.f32 %v710_v46, %v702_v30  ;;  %v778_v17 = vpop.permute.xlu0 %777  ;;  %v846_v30 = vld [vmem:[%s1584_s2] sm:$0xff] }
 0x150   :  { %v789_v52 = vadd.f32 %v1285_v54, %v730_v15  ;;  %v790_v57 = vadd.f32 %v1292_v3, %v1523_v12  ;;  %v795_v54 = vadd.f32 %v1186_v43, %v754_v44 }
 0x152   :  { %v806_v12 = vmax.f32 %v790_v57, %v794_v38  ;;  %v807_v43 = vmax.f32 %v791_v11, %v795_v54 }
 0x154   :  { %v661_v4 = vpop.permute.xlu1 %660 }
 0x155   :  { %v696_v21 = vadd.f32 %v1298_v10, %v661_v4  ;;  %v793_v4 = vadd.f32 %v1280_v53, %v746_v55  ;;  %v801_v10 = vadd.f32 %v1316_v34, %v778_v17 }
 0x157   :  { %v708_v33 = vmax.f32 %v704_v18, %v696_v21  ;;  %v805_v21 = vmax.f32 %v789_v52, %v793_v4 }
 0x158   :  { %v665_v26 = vpop.permute.xlu1 %664 }
 0x159   :  { %v697_v58 = vadd.f32 %v1311_v16, %v665_v26  ;;  %v788_v26 = vadd.f32 %v1265_v8, %v1521_v50  ;;  %v809_v14 = vmax.f32 %v805_v21, %v797_v0 }
 0x15b   :  { %v709_v20 = vmax.f32 %v705_v7, %v697_v58  ;;  %v804_v55 = vmax.f32 %v788_v26, %v792_v6 }
 0x15d   :  { %v758_v37 = vpop.permute.xlu1 %757 }
 0x15e   :  { %v796_v53 = vadd.f32 %v1296_v9, %v758_v37 }
 0x160   :  { %v808_v44 = vmax.f32 %v804_v55, %v796_v53 }
 0x161   :  { %v766_v40 = vpop.permute.xlu1 %765 }
 0x162   :  { %v798_v15 = vadd.f32 %v1311_v16, %v766_v40 }
 0x164   :  { %v810_v48 = vmax.f32 %v806_v12, %v798_v15 }
 0x165   :  { %v770_v27 = vpop.permute.xlu1 %769 }
 0x166   :  { %v799_v3 = vadd.f32 %v1209_v51, %v770_v27  ;;  %v813_v51 = vmax.f32 %v809_v14, %v801_v10 }
 0x168   :  { %v811_v22 = vmax.f32 %v807_v43, %v799_v3 }
 0x16a   :  { %v677_v45 = vpop.permute.xlu1 %676 }
 0x16b   :  { %v700_v56 = vadd.f32 %v1316_v34, %v677_v45 }
 0x16d   :  { %v712_v36 = vmax.f32 %v708_v33, %v700_v56 }
 0x16e   :  { %v681_v25 = vpop.permute.xlu1 %680 }
 0x16f   :  { %v715_v59 = vmax.f32 %v711_v47, %v712_v36  ;;  %v701_v13 = vadd.f32 %v1335_v41, %v681_v25 }
 0x171   :  { %v713_v19 = vmax.f32 %v709_v20, %v701_v13 }
 0x173   :  { %v716_v23 = vmax.f32 %v713_v19, %v714_v62  ;;  %v774_v32 = vpop.permute.xlu1 %773 }
 0x174   :  { %v800_v63 = vadd.f32 %v1322_v49, %v774_v32 }
 0x175   :  { %v717_v24 = vmax.f32 %v715_v59, %v716_v23 }
 0x176   :  { %v812_v42 = vmax.f32 %v808_v44, %v800_v63 }
 0x177   :  { %v718_v8 = vrot.slane %v717_v24, 4  ;;  %v782_v50 = vpop.permute.xlu1 %781 }
 0x178   :  { %v802_v9 = vadd.f32 %v1335_v41, %v782_v50  ;;  %v816_v34 = vmax.f32 %v812_v42, %v813_v51 }
 0x179   :  { %v719_v1 = vmax.f32 %v717_v24, %v718_v8 }
 0x17a   :  { %v814_v40 = vmax.f32 %v810_v48, %v802_v9 }
 0x17b   :  { %v720_v37 = vrot.slane %v719_v1, 2  ;;  %v786_v18 = vpop.permute.xlu1 %785 }
 0x17c   :  { %v803_v16 = vadd.f32 %v1240_v61, %v786_v18 }
 0x17d   :  { %v721_v39 = vmax.f32 %v719_v1, %v720_v37 }
 0x17e   :  { %v815_v49 = vmax.f32 %v811_v22, %v803_v16 }
 0x17f   :  { %v722_v27 = vrot.slane %v721_v39, 1 }
 0x180   :  { %v817_v5 = vmax.f32 %v814_v40, %v815_v49 }
 0x181   :  { %v723_v28 = vmax.f32 %v721_v39, %v722_v27 }
 0x182   :  { %v818_v45 = vmax.f32 %v816_v34, %v817_v5 }
 0x183   :  { %v834_v2 = vsel %vm833_vm4, %v1528_v29, %v723_v28 }
 0x184   :  { %v819_v41 = vrot.slane %v818_v45, 4 }
 0x186   :  { %v820_v33 = vmax.f32 %v818_v45, %v819_v41 }
 0x188   :  { %v821_v58 = vrot.slane %v820_v33, 2 }
 0x18a   :  { %v822_v56 = vmax.f32 %v820_v33, %v821_v58 }
 0x18c   :  { %v823_v31 = vrot.slane %v822_v56, 1 }
 0x18e   :  { %v824_v61 = vmax.f32 %v822_v56, %v823_v31 }
 0x190   :  { %v836_v60 = vsel %vm835_vm5, %v834_v2, %v824_v61 }
 0x191   :  { %v838_v7 = vsel %vm837_vm6, %v836_v60, -1e+30 }
 0x192   :  { %v840_v47 = vmax.f32 %v838_v7, -1e+30 }
 0x194   :  { %v847_v36 = vsub.f32 %v840_v47, %v846_v30 }
 0x196   :  { %vm848_vm7 = vcmp.gt.f32.partialorder %v847_v36, -1e+29 }
 0x197   :  { %v849_v25 = vsel %vm848_vm7, %v847_v36, 0.0 }
 0x198   :  { %850 = vst [vmem:[%s1585_s4] sm:$0xff] %v849_v25 }

</bundles_post_ra>
